<compile_context>
chip_gen: v7x
topology: tpu7x:2x2x1
jax: 0.10.0
libtpu: 0.0.40
codegen_flags: <defaults>
</compile_context>

<pallas_src>
import functools

import jax
import jax.numpy as jnp
from jax.experimental import pallas as pl
from jax.experimental.pallas import tpu as pltpu


def _round_up(x: int, m: int) -> int:
    return ((x + m - 1) // m) * m


def make_fourier_unit_params(w_eff, b_eff, C: int, F: int, *, mxu_dtype=jnp.float32):
    """Build the kernel weight matrices ONCE from the folded conv+BN parameters.

    Returns:
      afwd     : (C*F, C*SP)  forward rFFT fused with 1x1 conv (+BN), zero-padded
      bias_row : (1, C*SP)    conv+BN bias per spectral column (zeros in pads), f32
      dinv     : (SP, F)      shared hermitian inverse-DFT block (zero pad rows)
    where Fh = F//2 + 1 and SP = round_up(2*Fh, 128).
    """
    Fh = F // 2 + 1
    SP = _round_up(2 * Fh, 128)
    scale = 1.0 / (float(F) ** 0.5)                       # fft_norm='ortho'

    k = jnp.arange(Fh, dtype=jnp.float32)
    f = jnp.arange(F, dtype=jnp.float32)

    # Forward rFFT: X[k] = sum_f x[f] * exp(-2*pi*i*k*f/F) / sqrt(F).
    ang = 2.0 * jnp.pi * k[:, None] * f[None, :] / F      # (Fh, F)
    cfwd = jnp.cos(ang) * scale                           # Re part
    sfwd = -jnp.sin(ang) * scale                          # Im part

    # Hermitian irFFT (DC/Nyquist weighted once, other bins twice).
    wgt = jnp.where((k == 0) | ((F % 2 == 0) & (k == F // 2)), 1.0, 2.0)   # (Fh,)
    ang2 = 2.0 * jnp.pi * f[:, None] * k[None, :] / F     # (F, Fh)
    cinv = wgt[None, :] * jnp.cos(ang2) * scale           # acts on Re(Y)
    sinv = -wgt[None, :] * jnp.sin(ang2) * scale          # acts on Im(Y)

    # Shared inverse-DFT block, padded to SP rows (pad rows are zero -> exact).
    dinv = jnp.zeros((SP, F), jnp.float32)
    dinv = dinv.at[:Fh, :].set(cinv.T)
    dinv = dinv.at[Fh:2 * Fh, :].set(sinv.T)

    # Fuse the 1x1 conv (+ folded BN) into the forward DFT.
    # z column layout per output channel c: [Re(Y_c)[0..Fh) | Im(Y_c)[0..Fh) | 0-pad],
    # slab width SP, so every per-channel slab starts on a 128-lane boundary.
    w = w_eff.astype(jnp.float32)
    w_rr = w[0::2, 0::2]   # (C, C)  Re-out <- Re-in
    w_ri = w[0::2, 1::2]   # (C, C)  Re-out <- Im-in
    w_ir = w[1::2, 0::2]   # (C, C)  Im-out <- Re-in
    w_ii = w[1::2, 1::2]   # (C, C)  Im-out <- Im-in
    # afwd4[i, f, c, col]: input channel i, input freq f -> output channel c, column col.
    re_block = (jnp.einsum('ci,kf->ifck', w_rr, cfwd)
                + jnp.einsum('ci,kf->ifck', w_ri, sfwd))          # (C, F, C, Fh)
    im_block = (jnp.einsum('ci,kf->ifck', w_ir, cfwd)
                + jnp.einsum('ci,kf->ifck', w_ii, sfwd))          # (C, F, C, Fh)
    afwd4 = jnp.zeros((C, F, C, SP), jnp.float32)
    afwd4 = afwd4.at[..., :Fh].set(re_block)
    afwd4 = afwd4.at[..., Fh:2 * Fh].set(im_block)
    afwd = afwd4.reshape(C * F, C * SP)

    # Bias per spectral column; pad columns stay exactly zero.
    b = b_eff.astype(jnp.float32)
    bias4 = jnp.zeros((C, SP), jnp.float32)
    bias4 = bias4.at[:, :Fh].set(jnp.broadcast_to(b[0::2, None], (C, Fh)))
    bias4 = bias4.at[:, Fh:2 * Fh].set(jnp.broadcast_to(b[1::2, None], (C, Fh)))
    bias_row = bias4.reshape(1, C * SP)

    return afwd.astype(mxu_dtype), bias_row, dinv.astype(mxu_dtype)


@functools.partial(jax.jit, static_argnames=("tm",))
def fourier_unit_apply(x, afwd, bias_row, dinv, *, tm=256):
    """FourierUnit forward (use_only_freq=True, fu_kernel=1, fft_norm='ortho').

    x        : (B, C, F, E) float32
    afwd, bias_row, dinv : from make_fourier_unit_params (built once, reused).
    tm       : row-tile size over the flattened B*E axis (multiple of 8 for f32,
               16 for bf16; 256-512 at production shapes).
    """
    B, C, F, E = x.shape
    SP = dinv.shape[0]
    mxu_dtype = afwd.dtype

    R = B * E
    tm = max(8, (min(tm, _round_up(R, 8)) // 8) * 8)
    R_pad = _round_up(R, tm)

    # Lane-dense layout: rows = B*E, lanes = C*F (layout plumbing stays in XLA).
    x2d = x.astype(mxu_dtype).transpose(0, 3, 1, 2).reshape(R, C * F)
    if R_pad != R:
        x2d = jnp.pad(x2d, ((0, R_pad - R), (0, 0)))

    def kernel(x_ref, afwd_ref, bias_ref, dinv_ref, o_ref):
        # rFFT + 1x1 conv (+ folded BN): one MXU matmul, f32 accumulation.
        z = jnp.dot(x_ref[...], afwd_ref[...], preferred_element_type=jnp.float32)
        # bias + ReLU stay in f32 on the VPU (v5e has no bf16 VPU path).
        z = jnp.maximum(z + bias_ref[...], 0.0)
        zin = z.astype(dinv_ref.dtype)
        dmat = dinv_ref[...]
        # Block-diagonal hermitian irFFT: shared (SP, F) block applied per channel
        # (128-aligned lane slices of z; no dense kron, 1/C of the FLOPs & weight).
        for c in range(C):                       # C is a trace-time constant
            yc = jnp.dot(zin[:, c * SP:(c + 1) * SP], dmat,
                         preferred_element_type=jnp.float32)
            o_ref[:, c * F:(c + 1) * F] = yc.astype(o_ref.dtype)

    # Explicit VMEM budget: weights + double-buffered x/out tiles + z intermediate.
    isz = jnp.dtype(mxu_dtype).itemsize
    weight_bytes = (afwd.size * isz + dinv.size * isz + bias_row.size * 4)
    tile_bytes = 2 * tm * C * F * isz + 2 * tm * C * F * 4 + tm * C * SP * 4
    vmem_limit = int(min(max(2 * (weight_bytes + tile_bytes), 32 << 20), 100 << 20))

    grid_spec = pltpu.PrefetchScalarGridSpec(
        num_scalar_prefetch=0,
        grid=(R_pad // tm,),
        in_specs=[
            pl.BlockSpec((tm, C * F), lambda i: (i, 0)),      # x tile (pipelined)
            pl.BlockSpec((C * F, C * SP), lambda i: (0, 0)),  # afwd: VMEM-resident
            pl.BlockSpec((1, C * SP), lambda i: (0, 0)),      # bias: VMEM-resident
            pl.BlockSpec((SP, F), lambda i: (0, 0)),          # dinv: VMEM-resident
        ],
        out_specs=pl.BlockSpec((tm, C * F), lambda i: (i, 0)),
    )

    out2d = pl.pallas_call(
        kernel,
        out_shape=jax.ShapeDtypeStruct((R_pad, C * F), jnp.float32),
        grid_spec=grid_spec,
        compiler_params=pltpu.CompilerParams(
            dimension_semantics=("parallel",),
            vmem_limit_bytes=vmem_limit),
    )(x2d, afwd, bias_row, dinv)

    return out2d[:R].reshape(B, E, C, F).transpose(0, 2, 3, 1)


if __name__ == "__main__":
    B, C, F, E = 2, 4, 16, 16          # in_channels == out_channels == C
    key = jax.random.PRNGKey(0)
    kx, kw, kb, kg, kbeta, km, kv = jax.random.split(key, 7)

    x = jax.random.normal(kx, (B, C, F, E), dtype=jnp.float32)

    # Deterministic parameters: Conv2d(2C, 2C, kernel=1, bias=True) + BatchNorm2d(2C).
    w = jax.random.normal(kw, (2 * C, 2 * C), dtype=jnp.float32) * 0.2    # (O, I, 1, 1) squeezed
    bconv = jax.random.normal(kb, (2 * C,), dtype=jnp.float32) * 0.1
    gamma = 1.0 + 0.1 * jax.random.normal(kg, (2 * C,), dtype=jnp.float32)
    beta = 0.1 * jax.random.normal(kbeta, (2 * C,), dtype=jnp.float32)
    rmean = 0.1 * jax.random.normal(km, (2 * C,), dtype=jnp.float32)
    rvar = 1.0 + 0.1 * jnp.abs(jax.random.normal(kv, (2 * C,), dtype=jnp.float32))
    eps = 1e-5

    # TODO(synk): BatchNorm is applied in inference mode (running stats folded into
    # the 1x1 conv); training-mode batch statistics are not computed inside the kernel.
    s = gamma / jnp.sqrt(rvar + eps)
    w_eff = w * s[:, None]
    b_eff = s * (bconv - rmean) + beta

    # Weights built ONCE (not per forward).  mxu_dtype=jnp.bfloat16 recommended on
    # v6e/v7x at production shapes after validating accuracy.
    afwd, bias_row, dinv = make_fourier_unit_params(w_eff, b_eff, C, F,
                                                    mxu_dtype=jnp.float32)

    # tm=8 exercises a real multi-step, pipelined grid at toy size (use 256+ in prod).
    out = jax.block_until_ready(fourier_unit_apply(x, afwd, bias_row, dinv, tm=8))

    # Pure-JAX reference of the exact PyTorch forward (use_only_freq=True path).
    Fh = F // 2 + 1
    X = jnp.fft.rfft(x, axis=2, norm="ortho")
    z = jnp.stack((X.real, X.imag), axis=2).reshape(B, 2 * C, Fh, E)
    y = jnp.einsum("oi,bike->boke", w_eff, z) + b_eff[None, :, None, None]
    y = jnp.maximum(y, 0.0).reshape(B, C, 2, Fh, E)
    Y = y[:, :, 0] + 1j * y[:, :, 1]
    ref = jnp.fft.irfft(Y, n=F, axis=2, norm="ortho")

    assert out.shape == x.shape == (B, C, F, E)
    assert jnp.allclose(out, ref, atol=1e-4, rtol=1e-4), float(jnp.max(jnp.abs(out - ref)))
    print("KERNEL_OK")
</pallas_src>

<mosaic_0001>
module attributes {stable_mosaic.version = 11 : i64} {
  func.func @kernel(%arg0: i32, %arg1: memref<8x64xf32, #tpu.memory_space<vmem>>, %arg2: memref<64x512xf32, #tpu.memory_space<vmem>>, %arg3: memref<1x512xf32, #tpu.memory_space<vmem>>, %arg4: memref<128x16xf32, #tpu.memory_space<vmem>>, %arg5: memref<8x64xf32, #tpu.memory_space<vmem>>) attributes {dimension_semantics = [#tpu.dimension_semantics<parallel>], iteration_bounds = array<i64: 4>, scalar_prefetch = 0 : i64, scratch_operands = 0 : i64, tpu.core_type = #tpu.core_type<tc>, window_params = [{transform_indices = @transform_0, window_bounds = array<i64: 8, 64>}, {pipeline_mode = #tpu.pipeline_mode<synchronous>, transform_indices = @transform_1, window_bounds = array<i64: 64, 512>}, {pipeline_mode = #tpu.pipeline_mode<synchronous>, transform_indices = @transform_2, window_bounds = array<i64: 1, 512>}, {pipeline_mode = #tpu.pipeline_mode<synchronous>, transform_indices = @transform_3, window_bounds = array<i64: 128, 16>}, {transform_indices = @transform_4, window_bounds = array<i64: 8, 64>}]} {
    %c0 = arith.constant 0 : index
    %c0_0 = arith.constant 0 : index
    %0 = vector.load %arg1[%c0, %c0_0] : memref<8x64xf32, #tpu.memory_space<vmem>>, vector<8x64xf32>
    %c0_1 = arith.constant 0 : index
    %c0_2 = arith.constant 0 : index
    %1 = vector.load %arg2[%c0_1, %c0_2] : memref<64x512xf32, #tpu.memory_space<vmem>>, vector<64x512xf32>
    %cst = arith.constant dense<0.000000e+00> : vector<8x512xf32>
    %2 = tpu.matmul %0, %1, %cst {dimension_numbers = #tpu.dot_dimension_numbers<[1], [0], [0], [1], [0, 0, 1, 1], [], []>} : vector<8x64xf32>, vector<64x512xf32>, vector<8x512xf32> -> vector<8x512xf32>
    %c0_3 = arith.constant 0 : index
    %c0_4 = arith.constant 0 : index
    %3 = vector.load %arg3[%c0_3, %c0_4] : memref<1x512xf32, #tpu.memory_space<vmem>>, vector<1x512xf32>
    %4 = vector.broadcast %3 : vector<1x512xf32> to vector<8x512xf32>
    %5 = arith.addf %2, %4 : vector<8x512xf32>
    %cst_5 = arith.constant 0.000000e+00 : f32
    %6 = vector.broadcast %cst_5 : f32 to vector<8x512xf32>
    %7 = arith.maximumf %5, %6 : vector<8x512xf32>
    %c0_6 = arith.constant 0 : index
    %c0_7 = arith.constant 0 : index
    %8 = vector.load %arg4[%c0_6, %c0_7] : memref<128x16xf32, #tpu.memory_space<vmem>>, vector<128x16xf32>
    %9 = vector.extract_strided_slice %7 {offsets = [0, 0], sizes = [8, 128], strides = [1, 1]} : vector<8x512xf32> to vector<8x128xf32>
    %cst_8 = arith.constant dense<0.000000e+00> : vector<8x16xf32>
    %10 = tpu.matmul %9, %8, %cst_8 {dimension_numbers = #tpu.dot_dimension_numbers<[1], [0], [0], [1], [0, 0, 1, 1], [], []>} : vector<8x128xf32>, vector<128x16xf32>, vector<8x16xf32> -> vector<8x16xf32>
    %c0_9 = arith.constant 0 : index
    %c0_10 = arith.constant 0 : index
    %11 = vector.load %arg5[%c0_9, %c0_10] : memref<8x64xf32, #tpu.memory_space<vmem>>, vector<8x16xf32>
    tpu.vector_store %arg5[%c0_9, %c0_10], %10 {strides = array<i32>} : memref<8x64xf32, #tpu.memory_space<vmem>>, vector<8x16xf32>,
    %12 = vector.extract_strided_slice %7 {offsets = [0, 128], sizes = [8, 128], strides = [1, 1]} : vector<8x512xf32> to vector<8x128xf32>
    %cst_11 = arith.constant dense<0.000000e+00> : vector<8x16xf32>
    %13 = tpu.matmul %12, %8, %cst_11 {dimension_numbers = #tpu.dot_dimension_numbers<[1], [0], [0], [1], [0, 0, 1, 1], [], []>} : vector<8x128xf32>, vector<128x16xf32>, vector<8x16xf32> -> vector<8x16xf32>
    %c0_12 = arith.constant 0 : index
    %c16 = arith.constant 16 : index
    %14 = vector.load %arg5[%c0_12, %c16] : memref<8x64xf32, #tpu.memory_space<vmem>>, vector<8x16xf32>
    tpu.vector_store %arg5[%c0_12, %c16], %13 {strides = array<i32>} : memref<8x64xf32, #tpu.memory_space<vmem>>, vector<8x16xf32>,
    %15 = vector.extract_strided_slice %7 {offsets = [0, 256], sizes = [8, 128], strides = [1, 1]} : vector<8x512xf32> to vector<8x128xf32>
    %cst_13 = arith.constant dense<0.000000e+00> : vector<8x16xf32>
    %16 = tpu.matmul %15, %8, %cst_13 {dimension_numbers = #tpu.dot_dimension_numbers<[1], [0], [0], [1], [0, 0, 1, 1], [], []>} : vector<8x128xf32>, vector<128x16xf32>, vector<8x16xf32> -> vector<8x16xf32>
    %c0_14 = arith.constant 0 : index
    %c32 = arith.constant 32 : index
    %17 = vector.load %arg5[%c0_14, %c32] : memref<8x64xf32, #tpu.memory_space<vmem>>, vector<8x16xf32>
    tpu.vector_store %arg5[%c0_14, %c32], %16 {strides = array<i32>} : memref<8x64xf32, #tpu.memory_space<vmem>>, vector<8x16xf32>,
    %18 = vector.extract_strided_slice %7 {offsets = [0, 384], sizes = [8, 128], strides = [1, 1]} : vector<8x512xf32> to vector<8x128xf32>
    %cst_15 = arith.constant dense<0.000000e+00> : vector<8x16xf32>
    %19 = tpu.matmul %18, %8, %cst_15 {dimension_numbers = #tpu.dot_dimension_numbers<[1], [0], [0], [1], [0, 0, 1, 1], [], []>} : vector<8x128xf32>, vector<128x16xf32>, vector<8x16xf32> -> vector<8x16xf32>
    %c0_16 = arith.constant 0 : index
    %c48 = arith.constant 48 : index
    %20 = vector.load %arg5[%c0_16, %c48] : memref<8x64xf32, #tpu.memory_space<vmem>>, vector<8x16xf32>
    tpu.vector_store %arg5[%c0_16, %c48], %19 {strides = array<i32>} : memref<8x64xf32, #tpu.memory_space<vmem>>, vector<8x16xf32>,
    return
  }
  func.func @transform_0(%arg0: i32) -> (i32, i32) {
    %c0_i32 = arith.constant 0 : i32
    %c0_i32_0 = arith.constant 0 : i32
    return %arg0, %c0_i32 : i32, i32
  }
  func.func @transform_1(%arg0: i32) -> (i32, i32) {
    %c0_i32 = arith.constant 0 : i32
    %c0_i32_0 = arith.constant 0 : i32
    %c0_i32_1 = arith.constant 0 : i32
    return %c0_i32, %c0_i32_0 : i32, i32
  }
  func.func @transform_2(%arg0: i32) -> (i32, i32) {
    %c0_i32 = arith.constant 0 : i32
    %c0_i32_0 = arith.constant 0 : i32
    %c0_i32_1 = arith.constant 0 : i32
    return %c0_i32, %c0_i32_0 : i32, i32
  }
  func.func @transform_3(%arg0: i32) -> (i32, i32) {
    %c0_i32 = arith.constant 0 : i32
    %c0_i32_0 = arith.constant 0 : i32
    %c0_i32_1 = arith.constant 0 : i32
    return %c0_i32, %c0_i32_0 : i32, i32
  }
  func.func @transform_4(%arg0: i32) -> (i32, i32) {
    %c0_i32 = arith.constant 0 : i32
    %c0_i32_0 = arith.constant 0 : i32
    return %arg0, %c0_i32 : i32, i32
  }
}

</mosaic_0001>

<bundles_post_ra>
// kernel: fourier_unit_apply.1
= control target key start
LH: loop header
LB: loop body
LE: loop exit
PB: predicated region body
PF: predicated region fallthrough
CT: control target
= control target key end

     0   :  { %s1167_s15 = smov 0   ;;  %s1434_s0 = inlined_call_operand.vmem [shape: f32[32,64], index: 0, kind: input, shape index: {}]   ;;  %s1435_s1 = inlined_call_operand.vmem [shape: f32[64,512], index: 1, kind: input, shape index: {}]   ;;  %s1436_s2 = inlined_call_operand.vmem [shape: f32[1,512], index: 2, kind: input, shape index: {}]   ;;  %s1437_s3 = inlined_call_operand.vmem [shape: f32[128,16], index: 3, kind: input, shape index: {}]   ;;  %s1438_s4 = inlined_call_operand.vmem [shape: f32[32,64], index: 4, kind: output, shape index: {}]  }
   0x1 LB: > { %s767_s16 = sadd.s32 4294967295, %s1134_s15   ;;  %p771_p0 = scmp.ge.s32.totalorder %s1134_s15, 1  ;;  %s1134_s15 = sphi %s1167_s15, %s14_s15  }
   0x2   : > { %p161_p1 = scmp.lt.s32.totalorder %s1134_s15, 5 }
   0x4   : > { %p162_p2 = pnand %p771_p0, %p161_p1 }
   0x5   : > { %v195_v0 = vld [vmem:[%s1435_s1 + $0x8] sm:$0xff] (!%p162_p2)  ;;  %v194_v2 = vld [vmem:[%s1435_s1] sm:$0xff] (!%p162_p2)  ;;  %v1136_v7 = vmov (!%p162_p2), 0.0   ;;  %p185_p3 = scmp.lt.s32.totalorder (!%p162_p2), %s767_s16, 3  ;;  %v197_v19 = vld [vmem:[%s1435_s1 + $0x18] sm:$0xff] (!%p162_p2)  ;;  %vm248_vm0 = vcmask (!%p162_p2), 523264  }
   0x6   : > { %165 = sbr.rel (%p162_p2) target bundleno = 602 (0x25a), region = 36  ;;  %v199_v1 = vld [vmem:[%s1435_s1 + $0x28] sm:$0xff] (!%p162_p2)  ;;  %v198_v4 = vld [vmem:[%s1435_s1 + $0x20] sm:$0xff] (!%p162_p2)  ;;  %316 = vmatprep.mubr.f32.mxu0 (!%p162_p2), %v1136_v7  ;;  %387 = vmatprep.mubr.f32.mxu1 (!%p162_p2), %v1136_v7  ;;  %v201_v20 = vld [vmem:[%s1435_s1 + $0x38] sm:$0xff] (!%p162_p2)  ;;  %v1137_v53 = vmov (!%p162_p2), 0.0|0.0   ;;  %vm1138_vm1 = vmmov (!%p162_p2), 0  }
   0x7   : > { %v986_v3 = vpack.c.bf16 (!%p162_p2), %v199_v1, %v195_v0  ;;  %v203_v5 = vld [vmem:[%s1435_s1 + $0x48] sm:$0xff] (!%p162_p2)  ;;  %v988_v8 = vpack.c.bf16 (!%p162_p2), %v198_v4, %v194_v2  ;;  %v202_v10 = vld [vmem:[%s1435_s1 + $0x40] sm:$0xff] (!%p162_p2)  ;;  %v1002_v22 = vpack.c.bf16 (!%p162_p2), %v201_v20, %v197_v19  ;;  %v196_v23 = vld [vmem:[%s1435_s1 + $0x10] sm:$0xff] (!%p162_p2)  ;;  %vm484_vm2 = vcmask (!%p162_p2), 130048   ;;  %s1139_s28 = smov (!%p162_p2), 16   ;;  %s1140_s29 = smov (!%p162_p2), 32  }
   0x8   : > { %v207_v6 = vld [vmem:[%s1435_s1 + $0x68] sm:$0xff] (!%p162_p2)  ;;  %v206_v11 = vld [vmem:[%s1435_s1 + $0x60] sm:$0xff] (!%p162_p2)  ;;  %v200_v24 = vld [vmem:[%s1435_s1 + $0x30] sm:$0xff] (!%p162_p2)  ;;  %s1141_s30 = smov (!%p162_p2), 48   ;;  %vm560_vm3 = vcmask (!%p162_p2), 261248   ;;  %vm636_vm4 = vcmask (!%p162_p2), 392448  }
   0x9   : > { %v990_v9 = vpack.c.bf16 (!%p162_p2), %v207_v6, %v203_v5  ;;  %v211_v12 = vld [vmem:[%s1435_s1 + $0x88] sm:$0xff] (!%p162_p2)  ;;  %987 = vmatprep.subr.bf16.mxu0 (!%p162_p2), %v986_v3  ;;  %v992_v14 = vpack.c.bf16 (!%p162_p2), %v206_v11, %v202_v10  ;;  %v210_v15 = vld [vmem:[%s1435_s1 + $0x80] sm:$0xff] (!%p162_p2)  ;;  %v1004_v25 = vpack.c.bf16 (!%p162_p2), %v200_v24, %v196_v23  ;;  %v205_v26 = vld [vmem:[%s1435_s1 + $0x58] sm:$0xff] (!%p162_p2)  ;;  %1003 = vmatprep.subr.bf16.mxu1 (!%p162_p2), %v1002_v22  ;;  %vm712_vm5 = vcmask (!%p162_p2), 523648  }
   0xa   : > { %v215_v13 = vld [vmem:[%s1435_s1 + $0xa8] sm:$0xff] (!%p162_p2)  ;;  %989 = vmatpush1.bf16.msra.mxu0 (!%p162_p2), %v988_v8  ;;  %v214_v16 = vld [vmem:[%s1435_s1 + $0xa0] sm:$0xff] (!%p162_p2)  ;;  %v209_v27 = vld [vmem:[%s1435_s1 + $0x78] sm:$0xff] (!%p162_p2) }
   0xb   : > { %991 = vmatprep.subr.bf16.mxu0 (!%p162_p2), %v990_v9  ;;  %v994_v17 = vpack.c.bf16 (!%p162_p2), %v215_v13, %v211_v12  ;;  %v219_v18 = vld [vmem:[%s1435_s1 + $0xc8] sm:$0xff] (!%p162_p2)  ;;  %v204_v28 = vld [vmem:[%s1435_s1 + $0x50] sm:$0xff] (!%p162_p2)  ;;  %v996_v29 = vpack.c.bf16 (!%p162_p2), %v214_v16, %v210_v15  ;;  %v1006_v30 = vpack.c.bf16 (!%p162_p2), %v209_v27, %v205_v26  ;;  %v213_v32 = vld [vmem:[%s1435_s1 + $0x98] sm:$0xff] (!%p162_p2)  ;;  %1005 = vmatpush1.bf16.msra.mxu1 (!%p162_p2), %v1004_v25  ;;  %v228_v12 = vlaneseq (!%p162_p2) }
   0xc   : > { %v223_v21 = vld [vmem:[%s1435_s1 + $0xe8] sm:$0xff] (!%p162_p2)  ;;  %v208_v31 = vld [vmem:[%s1435_s1 + $0x70] sm:$0xff] (!%p162_p2)  ;;  %v217_v33 = vld [vmem:[%s1435_s1 + $0xb8] sm:$0xff] (!%p162_p2) }
   0xd   : > { %s1440_s16 = smov (!%p185_p3, %s767_s16), 3  ;;  %v998_v34 = vpack.c.bf16 %v223_v21, %v219_v18  ;;  %v218_v35 = vld [vmem:[%s1435_s1 + $0xc0] sm:$0xff]  ;;  %v1008_v37 = vpack.c.bf16 %v208_v31, %v204_v28  ;;  %1007 = vmatprep.subr.bf16.mxu1 %v1006_v30  ;;  %v1010_v38 = vpack.c.bf16 %v217_v33, %v213_v32  ;;  %v212_v39 = vld [vmem:[%s1435_s1 + $0x90] sm:$0xff]  ;;  %v221_v41 = vld [vmem:[%s1435_s1 + $0xd8] sm:$0xff]  ;;  %v229_v13 = vshrl.u32 %v228_v12, 7 }
   0xe   : > { %993 = vmatpush1.bf16.msra.mxu0 %v992_v14  ;;  %v222_v36 = vld [vmem:[%s1435_s1 + $0xe0] sm:$0xff]  ;;  %s772_s21 = sshll.u32 %s1440_s16, 3  ;;  %v216_v40 = vld [vmem:[%s1435_s1 + $0xb0] sm:$0xff]  ;;  %v225_v42 = vld [vmem:[%s1435_s1 + $0xf8] sm:$0xff] }
   0xf   : > { %995 = vmatprep.subr.bf16.mxu0 %v994_v17  ;;  %v1000_v43 = vpack.c.bf16 %v222_v36, %v218_v35  ;;  %s188_s6 = scalar_lea.vmem %s1434_s0, %s772_s21  ;;  %1009 = vmatpush1.bf16.msra.mxu1 %v1008_v37  ;;  %v1012_v44 = vpack.c.bf16 %v216_v40, %v212_v39  ;;  %v398_v45 = vld [vmem:[%s1437_s3] sm:$0xff]  ;;  %v399_v46 = vld [vmem:[%s1437_s3 + $0x8] sm:$0xff]  ;;  %v1014_v47 = vpack.c.bf16 %v225_v42, %v221_v41  ;;  %v220_v48 = vld [vmem:[%s1435_s1 + $0xd0] sm:$0xff]  ;;  %v230_v14 = vsub.s32 0, %v229_v13  ;;  %s192_s27 = scalar_lea.vmem %s1438_s4, %s772_s21 }
  0x10   : > { %1011 = vmatprep.subr.bf16.mxu1 %v1010_v38  ;;  %v224_v49 = vld [vmem:[%s1435_s1 + $0xf0] sm:$0xff]  ;;  %v193_v50 = vld [vmem:[%s188_s6] sm:$0xff]  ;;  %v1291_v51 = vpack.c.bf16 %v399_v46, %v398_v45  ;;  %v401_v55 = vld [vmem:[%s1437_s3 + $0x18] sm:$0xff]  ;;  %v234_v16 = vsub.s32 1, %v229_v13  ;;  %v242_v27 = vsub.s32 3, %v229_v13 }
  0x11   : > { %v1016_v52 = vpack.c.bf16 %v224_v49, %v220_v48  ;;  %v400_v54 = vld [vmem:[%s1437_s3 + $0x10] sm:$0xff]  ;;  %v402_v57 = vld [vmem:[%s1437_s3 + $0x20] sm:$0xff]  ;;  %v403_v58 = vld [vmem:[%s1437_s3 + $0x28] sm:$0xff] }
  0x12   : > { %997 = vmatpush1.bf16.msra.mxu0 %v996_v29  ;;  %v1302_v56 = vpack.c.bf16 %v401_v55, %v400_v54  ;;  %v1314_v59 = vpack.c.bf16 %v403_v58, %v402_v57  ;;  %v404_v60 = vld [vmem:[%s1437_s3 + $0x30] sm:$0xff]  ;;  %v405_v61 = vld [vmem:[%s1437_s3 + $0x38] sm:$0xff]  ;;  %v406_v63 = vld [vmem:[%s1437_s3 + $0x40] sm:$0xff] }
  0x13   : > { %999 = vmatprep.subr.bf16.mxu0 %v998_v34  ;;  %1013 = vmatpush1.bf16.msra.mxu1 %v1012_v44  ;;  %v1326_v62 = vpack.c.bf16 %v405_v61, %v404_v60  ;;  %v407_v0 = vld [vmem:[%s1437_s3 + $0x48] sm:$0xff]  ;;  %v408_v2 = vld [vmem:[%s1437_s3 + $0x50] sm:$0xff]  ;;  %v409_v3 = vld [vmem:[%s1437_s3 + $0x58] sm:$0xff] }
  0x14   : > { %1015 = vmatprep.subr.bf16.mxu1 %v1014_v47  ;;  %v1338_v1 = vpack.c.bf16 %v407_v0, %v406_v63  ;;  %v1350_v4 = vpack.c.bf16 %v409_v3, %v408_v2  ;;  %v410_v5 = vld [vmem:[%s1437_s3 + $0x60] sm:$0xff]  ;;  %v411_v6 = vld [vmem:[%s1437_s3 + $0x68] sm:$0xff]  ;;  %v412_v9 = vld [vmem:[%s1437_s3 + $0x70] sm:$0xff] }
  0x15   : > { %v1362_v8 = vpack.c.bf16 %v411_v6, %v410_v5  ;;  %v413_v10 = vld [vmem:[%s1437_s3 + $0x78] sm:$0xff]  ;;  %v226_v15 = vld [vmem:[%s1436_s2] sm:$0xf] }
  0x16   : > { %1001 = vmatpush1.bf16.msra.mxu0 %v1000_v43  ;;  %v1379_v11 = vpack.c.bf16 %v413_v10, %v412_v9  ;;  %v231_v17 = vrot.slane %v226_v15, %v230_v14  ;;  %v235_v18 = vrot.slane %v226_v15, %v234_v16  ;;  %v243_v29 = vrot.slane %v226_v15, %v242_v27 }
  0x17   : > { %1018 = vmatprep.subr.bf16.mxu0 %v1137_v53  ;;  %1017 = vmatpush1.bf16.msra.mxu1 %v1016_v52 }
  0x18   : > { %1042 = vmatprep.subr.bf16.mxu1 %v1137_v53 }
  0x19   : > { %774 = vmatmul.mubr.msk.f32.vlgmr.msra.gmra.mrb[0].mxu0 %vm248_vm0, %v193_v50 }
  0x1a   : > { %1020 = vmatpush3.bf16.msra.mxu0 %v1291_v51  ;;  %775 = vmatmul.mubr.msk.f32.vlgmr.msra.gmra.mrb[0].mxu1 %vm248_vm0, %v193_v50 }
  0x1b   : > { %1021 = vmatprep.subr.bf16.mxu0 %v1137_v53  ;;  %1044 = vmatpush3.bf16.msra.mxu1 %v1291_v51 }
  0x1c   : > { %1045 = vmatprep.subr.bf16.mxu1 %v1137_v53  ;;  %878 = vmatprep.mubr.msk.f32.mxu0 %vm1138_vm1, %v1136_v7 }
  0x1d   : > { %913 = vmatprep.mubr.msk.f32.mxu1 %vm1138_vm1, %v1136_v7 }
  0x1e   : > { %1023 = vmatpush3.bf16.msra.mxu0 %v1302_v56 }
  0x1f   : > { %1024 = vmatprep.subr.bf16.mxu0 %v1137_v53  ;;  %1047 = vmatpush3.bf16.msra.mxu1 %v1302_v56 }
  0x20   : > { %1048 = vmatprep.subr.bf16.mxu1 %v1137_v53 }
  0x22   : > { %1026 = vmatpush3.bf16.msra.mxu0 %v1314_v59 }
  0x23   : > { %1027 = vmatprep.subr.bf16.mxu0 %v1137_v53  ;;  %1050 = vmatpush3.bf16.msra.mxu1 %v1314_v59 }
  0x24   : > { %1051 = vmatprep.subr.bf16.mxu1 %v1137_v53 }
  0x26   : > { %1029 = vmatpush3.bf16.msra.mxu0 %v1326_v62 }
  0x27   : > { %1030 = vmatprep.subr.bf16.mxu0 %v1137_v53  ;;  %1053 = vmatpush3.bf16.msra.mxu1 %v1326_v62 }
  0x28   : > { %1054 = vmatprep.subr.bf16.mxu1 %v1137_v53 }
  0x2a   : > { %1032 = vmatpush3.bf16.msra.mxu0 %v1338_v1 }
  0x2b   : > { %1033 = vmatprep.subr.bf16.mxu0 %v1137_v53  ;;  %1056 = vmatpush3.bf16.msra.mxu1 %v1338_v1 }
  0x2c   : > { %1057 = vmatprep.subr.bf16.mxu1 %v1137_v53 }
  0x2e   : > { %1035 = vmatpush3.bf16.msra.mxu0 %v1350_v4 }
  0x2f   : > { %1036 = vmatprep.subr.bf16.mxu0 %v1137_v53  ;;  %1059 = vmatpush3.bf16.msra.mxu1 %v1350_v4 }
  0x30   : > { %1060 = vmatprep.subr.bf16.mxu1 %v1137_v53 }
  0x32   : > { %1038 = vmatpush3.bf16.msra.mxu0 %v1362_v8 }
  0x33   : > { %1039 = vmatprep.subr.bf16.mxu0 %v1137_v53  ;;  %1062 = vmatpush3.bf16.msra.mxu1 %v1362_v8 }
  0x34   : > { %1063 = vmatprep.subr.bf16.mxu1 %v1137_v53 }
  0x36   : > { %1041 = vmatpush3.bf16.msra.mxu0 %v1379_v11 }
  0x37   : > { %1065 = vmatpush3.bf16.msra.mxu1 %v1379_v11  ;;  %1066 = vmatprep.subr.bf16.mxu0 %v1137_v53 }
  0x38   : > { %1090 = vmatprep.subr.bf16.mxu1 %v1137_v53 }
  0xec   : > { %v318_v19 = vpop.f32.mrb[0].mxu0 }
  0xed   : > { %v319_v20 = vadd.f32 %v318_v19, %v231_v17  ;;  %v320_v21 = vpop.f32.mrb[1].mxu0  ;;  %v389_v25 = vpop.f32.mrb[0].mxu1 }
  0xee   : > { %v321_v22 = vadd.f32 %v320_v21, %v235_v18  ;;  %v391_v26 = vpop.f32.mrb[1].mxu1 }
  0xef   : > { %v394_v23 = vmax.f32 %v319_v20, 0.0  ;;  %v392_v31 = vadd.f32 %v391_v26, %v243_v29 }
  0xf0   : > { %v395_v24 = vmax.f32 %v321_v22, 0.0 }
  0xf1   : > { %879 = vmatmul.mubr.f32.vlgmr.msra.gmra.mrb[2].mxu0 %v394_v23  ;;  %v397_v33 = vmax.f32 %v392_v31, 0.0 }
  0xf2   : > { %1068 = vmatpush3.bf16.msra.mxu0 %v1291_v51  ;;  %914 = vmatmul.mubr.f32.vlgmr.msra.gmra.mrb[2].mxu1 %v395_v24 }
  0xf3   : > { %1092 = vmatpush3.bf16.msra.mxu1 %v1291_v51  ;;  %1069 = vmatprep.subr.bf16.mxu0 %v1137_v53 }
  0xf4   : > { %1093 = vmatprep.subr.bf16.mxu1 %v1137_v53  ;;  %948 = vmatprep.mubr.msk.f32.mxu0 %vm1138_vm1, %v1136_v7 }
  0xf5   : > { %983 = vmatprep.mubr.msk.f32.mxu1 %vm1138_vm1, %v1136_v7  ;;  %v238_v7 = vsub.s32 2, %v229_v13 }
  0xf6   : > { %1071 = vmatpush3.bf16.msra.mxu0 %v1302_v56 }
  0xf7   : > { %1095 = vmatpush3.bf16.msra.mxu1 %v1302_v56  ;;  %1072 = vmatprep.subr.bf16.mxu0 %v1137_v53  ;;  %v239_v28 = vrot.slane %v226_v15, %v238_v7 }
  0xf8   : > { %1096 = vmatprep.subr.bf16.mxu1 %v1137_v53 }
  0xf9   : > { %v390_v30 = vadd.f32 %v389_v25, %v239_v28 }
  0xfa   : > { %1074 = vmatpush3.bf16.msra.mxu0 %v1314_v59 }
  0xfb   : > { %1098 = vmatpush3.bf16.msra.mxu1 %v1314_v59  ;;  %1075 = vmatprep.subr.bf16.mxu0 %v1137_v53  ;;  %v396_v32 = vmax.f32 %v390_v30, 0.0 }
  0xfc   : > { %1099 = vmatprep.subr.bf16.mxu1 %v1137_v53 }
  0xfe   : > { %1077 = vmatpush3.bf16.msra.mxu0 %v1326_v62 }
  0xff   : > { %1101 = vmatpush3.bf16.msra.mxu1 %v1326_v62  ;;  %1078 = vmatprep.subr.bf16.mxu0 %v1137_v53 }
 0x100   : > { %1102 = vmatprep.subr.bf16.mxu1 %v1137_v53 }
 0x102   : > { %1080 = vmatpush3.bf16.msra.mxu0 %v1338_v1 }
 0x103   : > { %1104 = vmatpush3.bf16.msra.mxu1 %v1338_v1  ;;  %1081 = vmatprep.subr.bf16.mxu0 %v1137_v53 }
 0x104   : > { %1105 = vmatprep.subr.bf16.mxu1 %v1137_v53 }
 0x106   : > { %1083 = vmatpush3.bf16.msra.mxu0 %v1350_v4 }
 0x107   : > { %1107 = vmatpush3.bf16.msra.mxu1 %v1350_v4  ;;  %1084 = vmatprep.subr.bf16.mxu0 %v1137_v53 }
 0x108   : > { %1108 = vmatprep.subr.bf16.mxu1 %v1137_v53 }
 0x10a   : > { %1086 = vmatpush3.bf16.msra.mxu0 %v1362_v8 }
 0x10b   : > { %1110 = vmatpush3.bf16.msra.mxu1 %v1362_v8  ;;  %1087 = vmatprep.subr.bf16.mxu0 %v1137_v53 }
 0x10c   : > { %1111 = vmatprep.subr.bf16.mxu1 %v1137_v53 }
 0x10e   : > { %1089 = vmatpush3.bf16.msra.mxu0 %v1379_v11 }
 0x10f   : > { %1113 = vmatpush3.bf16.msra.mxu1 %v1379_v11 }
 0x111   : > { %949 = vmatmul.mubr.f32.vlgmr.msra.gmra.mrb[4].mxu0 %v396_v32 }
 0x112   : > { %984 = vmatmul.mubr.f32.vlgmr.msra.gmra.mrb[4].mxu1 %v397_v33 }
 0x1c4   : > { %v480_v34 = vpop.f32.mrb[2].mxu0 }
 0x1c5   : > { %485 = vst.msk [vmem:[%s192_s27] sm:$0xff] %vm484_vm2, %v480_v34  ;;  %v880_v35 = vpop.f32.mrb[3].mxu0  ;;  %v552_v36 = vpop.f32.mrb[2].mxu1 }
 0x1c6   : > { %557 = vrot.lane.b32.xlu0 %v552_v36, %s1139_s28  ;;  %v915_v37 = vpop.f32.mrb[3].mxu1 }
 0x1e4   : > { %v628_v38 = vpop.f32.mrb[4].mxu0 }
 0x1e5   : > { %v704_v39 = vpop.f32.mrb[4].mxu1  ;;  %633 = vrot.lane.b32.xlu0 %v628_v38, %s1140_s29  ;;  %v950_v40 = vpop.f32.mrb[5].mxu0 }
 0x1e6   : > { %709 = vrot.lane.b32.xlu1 %v704_v39, %s1141_s30  ;;  %v985_v41 = vpop.f32.mrb[5].mxu1 }
 0x238   : > { %v558_v42 = vpop.permute.xlu0 %557 }
 0x239   : > { %561 = vst.msk [vmem:[%s192_s27] sm:$0xff] %vm560_vm3, %v558_v42 }
 0x257   : > { %v634_v43 = vpop.permute.xlu0 %633 }
 0x258   : > { %637 = vst.msk [vmem:[%s192_s27] sm:$0xff] %vm636_vm4, %v634_v43  ;;  %v710_v44 = vpop.permute.xlu1 %709 }
 0x259   : > { %713 = vst.msk [vmem:[%s192_s27] sm:$0xff] %vm712_vm5, %v710_v44 }
 0x25a PF: > { %s14_s15 = sadd.s32 1, %s1134_s15  }
 0x25b   : > { %p11_p4 = scmp.ge.s32.totalorder %s14_s15, 6  }
 0x25d   :  { %13 = sbr.rel (!%p11_p4) target bundleno = 1 (0x1), region = 66 }

</bundles_post_ra>
